<compile_context>
chip_gen: v6e
topology: v6e:2x2x1
jax: 0.10.0
libtpu: 0.0.40
codegen_flags: <defaults>
</compile_context>

<pallas_src>
from functools import partial

import numpy as np
import jax
import jax.numpy as jnp
from jax import lax
from jax.experimental import pallas as pl
from jax.experimental.pallas import tpu as pltpu


def _update_kernel(start_ref, logits_ref, dids_ref, mem_in_ref, didx_in_ref,
                   mem_out_ref, didx_out_ref, sems):
    """Ring-buffer scatter into HBM-resident, aliased banks.

    start_ref   : SMEM (1,) int32      write position, already in [0, size)
    logits_ref  : VMEM (num, dim)      new logits batch
    dids_ref    : VMEM (num, 1) int32  dataset indices of the batch
    mem_in_ref  : ANY/HBM (size, dim)  same buffer as mem_out_ref (aliased)
    didx_in_ref : ANY/HBM (size, 1)    same buffer as didx_out_ref (aliased)
    mem_out_ref : ANY/HBM (size, dim)  memory bank, updated in place via DMA
    didx_out_ref: ANY/HBM (size, 1)    data-index bank, updated in place via DMA
    sems        : DMA semaphores, shape (2,)
    """
    del mem_in_ref, didx_in_ref  # aliased with the *_out refs; nothing to copy

    num = logits_ref.shape[0]
    size = mem_out_ref.shape[0]
    start = start_ref[0]

    no_wrap = start + num <= size

    @pl.when(no_wrap)
    def _():
        # Common case: one contiguous slab write, rows [start, start + num).
        cp_m = pltpu.make_async_copy(
            logits_ref, mem_out_ref.at[pl.ds(start, num), :], sems.at[0])
        cp_d = pltpu.make_async_copy(
            dids_ref, didx_out_ref.at[pl.ds(start, num), :], sems.at[1])
        cp_m.start()
        cp_d.start()
        cp_m.wait()
        cp_d.wait()

    @pl.when(jnp.logical_not(no_wrap))
    def _():
        # Rare wrap-around step: per-row DMA. Rows are distinct (num <= size),
        # so ordering does not affect the result.  Phase 1 issues every row
        # copy, phase 2 drains the semaphores -> all 2*num DMAs overlap.
        def start_row(i, carry):
            row = lax.rem(start + i, size)
            pltpu.make_async_copy(
                logits_ref.at[pl.ds(i, 1), :],
                mem_out_ref.at[pl.ds(row, 1), :], sems.at[0]).start()
            pltpu.make_async_copy(
                dids_ref.at[pl.ds(i, 1), :],
                didx_out_ref.at[pl.ds(row, 1), :], sems.at[1]).start()
            return carry

        lax.fori_loop(0, num, start_row, 0)

        def wait_row(i, carry):
            # All row copies have identical sizes, so waiting with a fixed
            # representative slice drains one completion per iteration.
            pltpu.make_async_copy(
                logits_ref.at[pl.ds(0, 1), :],
                mem_out_ref.at[pl.ds(0, 1), :], sems.at[0]).wait()
            pltpu.make_async_copy(
                dids_ref.at[pl.ds(0, 1), :],
                didx_out_ref.at[pl.ds(0, 1), :], sems.at[1]).wait()
            return carry

        lax.fori_loop(0, num, wait_row, 0)


@partial(jax.jit, donate_argnums=(0, 1))
def _memory_update(memory, data_idx_2d, start_arr, input_logits, data_idxs_2d):
    """In-place ring-buffer update. Banks are donated and aliased to outputs."""
    size, dim = memory.shape

    mem_out, didx_out = pl.pallas_call(
        _update_kernel,
        out_shape=(
            jax.ShapeDtypeStruct((size, dim), memory.dtype),
            jax.ShapeDtypeStruct((size, 1), jnp.int32),
        ),
        in_specs=[
            pl.BlockSpec(memory_space=pltpu.MemorySpace.SMEM),  # start index
            pl.BlockSpec(memory_space=pltpu.MemorySpace.VMEM),  # logits batch
            pl.BlockSpec(memory_space=pltpu.MemorySpace.VMEM),  # data idxs batch
            pl.BlockSpec(memory_space=pl.ANY),                  # memory bank (HBM)
            pl.BlockSpec(memory_space=pl.ANY),                  # data_idx bank (HBM)
        ],
        out_specs=(
            pl.BlockSpec(memory_space=pl.ANY),
            pl.BlockSpec(memory_space=pl.ANY),
        ),
        scratch_shapes=[pltpu.SemaphoreType.DMA((2,))],
        # memory -> output 0, data_idx bank -> output 1 (true in-place update).
        input_output_aliases={3: 0, 4: 1},
    )(start_arr, input_logits, data_idxs_2d, memory, data_idx_2d)
    return mem_out, didx_out


class LogitsMemory:
    """JAX/Pallas port of the torch LogitsMemory memory bank."""

    def __init__(self, dim=10, size=12):
        self.dim = dim
        self.size = size
        self.index = 0
        self.is_inited = False
        # Deterministic init (torch buffers are uninitialized; zeros here).
        self.memory = jnp.zeros((size, dim), jnp.float32)
        # TODO(synk): torch uses int64 (LongTensor); int32 used here (JAX default).
        self._data_idx = jnp.zeros((size, 1), jnp.int32)  # 2-D bank for safe DMA layout
        print('Bank shape: ({},{})'.format(self.size, dim))

    @property
    def data_idx(self):
        # Present the torch-shaped (size,) view of the index bank.
        return self._data_idx[:, 0]

    def forward(self, input_logits=None, update=True, enqueue=True, data_idxs=None):
        if update:
            num = int(input_logits.shape[0])
            if not enqueue:
                self.index -= num
            assert input_logits.shape[1] == self.dim
            # torch index_copy_ assumes distinct rows; slab/per-row paths rely on it.
            assert num <= self.size
            start = self.index % self.size  # Python %: non-negative, like torch
            start_arr = jnp.asarray([start], dtype=jnp.int32)
            dids = jnp.asarray(data_idxs, dtype=jnp.int32).reshape(num, 1)
            self.memory, self._data_idx = _memory_update(
                self.memory, self._data_idx, start_arr,
                input_logits.astype(self.memory.dtype), dids)
            # New ring index is host-computable: no device round-trip / sync.
            self.index = (self.index + num) % self.size
            idx = self.index
        else:
            idx = self.index
        return (self.memory, self.data_idx, idx)

    # TODO(synk): init(data_loader, model, head) is host-side dataloader/model
    # orchestration with no Pallas equivalent; call forward() in a loop instead.


if __name__ == "__main__":
    dim, size, num = 10, 12, 8
    key = jax.random.PRNGKey(0)
    k1, k2 = jax.random.split(key)

    logits1 = jax.random.normal(k1, (num, dim), jnp.float32)
    logits2 = jax.random.normal(k2, (num, dim), jnp.float32)
    dids1 = jnp.arange(num, dtype=jnp.int32)
    dids2 = jnp.arange(num, 2 * num, dtype=jnp.int32)

    # Host copies up front (the bank buffers are donated in-place by forward()).
    np_logits = [np.asarray(logits1), np.asarray(logits2)]
    np_dids = [np.asarray(dids1), np.asarray(dids2)]

    bank = LogitsMemory(dim=dim, size=size)
    mem, didx, idx = bank.forward(logits1, data_idxs=dids1)   # no-wrap slab path
    mem, didx, idx = bank.forward(logits2, data_idxs=dids2)   # wrap-around path
    jax.block_until_ready((mem, didx))

    # NumPy reference of the torch ring-buffer semantics.
    ref_mem = np.zeros((size, dim), np.float32)
    ref_didx = np.zeros((size,), np.int32)
    ref_index = 0
    for lg, di in zip(np_logits, np_dids):
        rows = (np.arange(num) + ref_index) % size
        ref_mem[rows] = lg
        ref_didx[rows] = di
        ref_index = (ref_index + num) % size

    assert np.allclose(np.asarray(mem), ref_mem, atol=1e-6)
    assert np.array_equal(np.asarray(didx), ref_didx)
    assert idx == ref_index
    print("KERNEL_OK")
</pallas_src>

<mosaic_0001>
module attributes {stable_mosaic.version = 11 : i64} {
  func.func @_update_kernel(%arg0: memref<1xi32, #tpu.memory_space<smem>>, %arg1: memref<8x10xf32, #tpu.memory_space<vmem>>, %arg2: memref<8x1xi32, #tpu.memory_space<vmem>>, %arg3: memref<12x10xf32, #tpu.memory_space<any>>, %arg4: memref<12x1xi32, #tpu.memory_space<any>>, %arg5: memref<12x10xf32, #tpu.memory_space<any>>, %arg6: memref<12x1xi32, #tpu.memory_space<any>>, %arg7: memref<2x!tpu.dma_semaphore, #tpu.memory_space<semaphore_mem>>) attributes {dimension_semantics = [], scalar_prefetch = 0 : i64, scratch_operands = 1 : i64, tpu.core_type = #tpu.core_type<tc>} {
    %c0 = arith.constant 0 : index
    %0 = memref.load %arg0[%c0] : memref<1xi32, #tpu.memory_space<smem>>
    %c8_i32 = arith.constant 8 : i32
    %1 = arith.addi %0, %c8_i32 : i32
    %c12_i32 = arith.constant 12 : i32
    %2 = arith.cmpi sle, %1, %c12_i32 : i32
    %3 = arith.extui %2 : i1 to i32
    %c0_i32 = arith.constant 0 : i32
    %4 = arith.cmpi ne, %3, %c0_i32 : i32
    scf.if %4 {
      %c0_i32_1 = arith.constant 0 : i32
      %c0_i32_2 = arith.constant 0 : i32
      %8 = tpu.memref_slice %arg5[%0, %c0_i32_2] : memref<12x10xf32, #tpu.memory_space<any>> -> memref<8x10xf32, #tpu.memory_space<any>>
      %9 = tpu.memref_slice %arg7[%c0_i32_1] : memref<2x!tpu.dma_semaphore, #tpu.memory_space<semaphore_mem>> -> memref<1x!tpu.dma_semaphore, #tpu.memory_space<semaphore_mem>>
      %10 = tpu.memref_squeeze %9 : memref<1x!tpu.dma_semaphore, #tpu.memory_space<semaphore_mem>> -> memref<!tpu.dma_semaphore, #tpu.memory_space<semaphore_mem>>
      tpu.enqueue_dma source(%arg1 : memref<8x10xf32, #tpu.memory_space<vmem>>) target(%8 : memref<8x10xf32, #tpu.memory_space<any>>) target_semaphore(%10 : memref<!tpu.dma_semaphore, #tpu.memory_space<semaphore_mem>>)
      %c1_i32 = arith.constant 1 : i32
      %c0_i32_3 = arith.constant 0 : i32
      %11 = tpu.memref_slice %arg6[%0, %c0_i32_3] : memref<12x1xi32, #tpu.memory_space<any>> -> memref<8x1xi32, #tpu.memory_space<any>>
      %12 = tpu.memref_slice %arg7[%c1_i32] : memref<2x!tpu.dma_semaphore, #tpu.memory_space<semaphore_mem>> -> memref<1x!tpu.dma_semaphore, #tpu.memory_space<semaphore_mem>>
      %13 = tpu.memref_squeeze %12 : memref<1x!tpu.dma_semaphore, #tpu.memory_space<semaphore_mem>> -> memref<!tpu.dma_semaphore, #tpu.memory_space<semaphore_mem>>
      tpu.enqueue_dma source(%arg2 : memref<8x1xi32, #tpu.memory_space<vmem>>) target(%11 : memref<8x1xi32, #tpu.memory_space<any>>) target_semaphore(%13 : memref<!tpu.dma_semaphore, #tpu.memory_space<semaphore_mem>>)
      %c0_i32_4 = arith.constant 0 : i32
      %c0_i32_5 = arith.constant 0 : i32
      %14 = tpu.memref_slice %arg5[%0, %c0_i32_5] : memref<12x10xf32, #tpu.memory_space<any>> -> memref<8x10xf32, #tpu.memory_space<any>>
      %15 = tpu.memref_slice %arg7[%c0_i32_4] : memref<2x!tpu.dma_semaphore, #tpu.memory_space<semaphore_mem>> -> memref<1x!tpu.dma_semaphore, #tpu.memory_space<semaphore_mem>>
      %16 = tpu.memref_squeeze %15 : memref<1x!tpu.dma_semaphore, #tpu.memory_space<semaphore_mem>> -> memref<!tpu.dma_semaphore, #tpu.memory_space<semaphore_mem>>
      tpu.wait_dma2 semaphore(%16 : memref<!tpu.dma_semaphore, #tpu.memory_space<semaphore_mem>>) src(%arg1 : memref<8x10xf32, #tpu.memory_space<vmem>>) dst(%14 : memref<8x10xf32, #tpu.memory_space<any>>)
      %c1_i32_6 = arith.constant 1 : i32
      %c0_i32_7 = arith.constant 0 : i32
      %17 = tpu.memref_slice %arg6[%0, %c0_i32_7] : memref<12x1xi32, #tpu.memory_space<any>> -> memref<8x1xi32, #tpu.memory_space<any>>
      %18 = tpu.memref_slice %arg7[%c1_i32_6] : memref<2x!tpu.dma_semaphore, #tpu.memory_space<semaphore_mem>> -> memref<1x!tpu.dma_semaphore, #tpu.memory_space<semaphore_mem>>
      %19 = tpu.memref_squeeze %18 : memref<1x!tpu.dma_semaphore, #tpu.memory_space<semaphore_mem>> -> memref<!tpu.dma_semaphore, #tpu.memory_space<semaphore_mem>>
      tpu.wait_dma2 semaphore(%19 : memref<!tpu.dma_semaphore, #tpu.memory_space<semaphore_mem>>) src(%arg2 : memref<8x1xi32, #tpu.memory_space<vmem>>) dst(%17 : memref<8x1xi32, #tpu.memory_space<any>>)
    } else {
    }
    %true = arith.constant true
    %5 = arith.xori %2, %true : i1
    %6 = arith.extui %5 : i1 to i32
    %c0_i32_0 = arith.constant 0 : i32
    %7 = arith.cmpi ne, %6, %c0_i32_0 : i32
    scf.if %7 {
      %c0_i32_1 = arith.constant 0 : i32
      %c8_i32_2 = arith.constant 8 : i32
      %8 = arith.addi %c0_i32_1, %c8_i32_2 : i32
      %c1_i32 = arith.constant 1 : i32
      scf.for %arg8 = %c0_i32_1 to %8 step %c1_i32  : i32 {
        %10 = arith.addi %0, %arg8 : i32
        %c12_i32_7 = arith.constant 12 : i32
        %11 = arith.remsi %10, %c12_i32_7 : i32
        %c0_i32_8 = arith.constant 0 : i32
        %c0_i32_9 = arith.constant 0 : i32
        %12 = tpu.memref_slice %arg1[%arg8, %c0_i32_9] : memref<8x10xf32, #tpu.memory_space<vmem>> -> memref<1x10xf32, #tpu.memory_space<vmem>>
        %c0_i32_10 = arith.constant 0 : i32
        %13 = tpu.memref_slice %arg5[%11, %c0_i32_10] : memref<12x10xf32, #tpu.memory_space<any>> -> memref<1x10xf32, #tpu.memory_space<any>>
        %14 = tpu.memref_slice %arg7[%c0_i32_8] : memref<2x!tpu.dma_semaphore, #tpu.memory_space<semaphore_mem>> -> memref<1x!tpu.dma_semaphore, #tpu.memory_space<semaphore_mem>>
        %15 = tpu.memref_squeeze %14 : memref<1x!tpu.dma_semaphore, #tpu.memory_space<semaphore_mem>> -> memref<!tpu.dma_semaphore, #tpu.memory_space<semaphore_mem>>
        tpu.enqueue_dma source(%12 : memref<1x10xf32, #tpu.memory_space<vmem>>) target(%13 : memref<1x10xf32, #tpu.memory_space<any>>) target_semaphore(%15 : memref<!tpu.dma_semaphore, #tpu.memory_space<semaphore_mem>>)
        %c1_i32_11 = arith.constant 1 : i32
        %c0_i32_12 = arith.constant 0 : i32
        %16 = tpu.memref_slice %arg2[%arg8, %c0_i32_12] : memref<8x1xi32, #tpu.memory_space<vmem>> -> memref<1x1xi32, #tpu.memory_space<vmem>>
        %c0_i32_13 = arith.constant 0 : i32
        %17 = tpu.memref_slice %arg6[%11, %c0_i32_13] : memref<12x1xi32, #tpu.memory_space<any>> -> memref<1x1xi32, #tpu.memory_space<any>>
        %18 = tpu.memref_slice %arg7[%c1_i32_11] : memref<2x!tpu.dma_semaphore, #tpu.memory_space<semaphore_mem>> -> memref<1x!tpu.dma_semaphore, #tpu.memory_space<semaphore_mem>>
        %19 = tpu.memref_squeeze %18 : memref<1x!tpu.dma_semaphore, #tpu.memory_space<semaphore_mem>> -> memref<!tpu.dma_semaphore, #tpu.memory_space<semaphore_mem>>
        tpu.enqueue_dma source(%16 : memref<1x1xi32, #tpu.memory_space<vmem>>) target(%17 : memref<1x1xi32, #tpu.memory_space<any>>) target_semaphore(%19 : memref<!tpu.dma_semaphore, #tpu.memory_space<semaphore_mem>>)
      }
      %c8_i32_3 = arith.constant 8 : i32
      %c0_i32_4 = arith.constant 0 : i32
      %c8_i32_5 = arith.constant 8 : i32
      %9 = arith.addi %c0_i32_4, %c8_i32_5 : i32
      %c1_i32_6 = arith.constant 1 : i32
      scf.for %arg8 = %c0_i32_4 to %9 step %c1_i32_6  : i32 {
        %c0_i32_7 = arith.constant 0 : i32
        %c0_i32_8 = arith.constant 0 : i32
        %c0_i32_9 = arith.constant 0 : i32
        %10 = tpu.memref_slice %arg1[%c0_i32_8, %c0_i32_9] : memref<8x10xf32, #tpu.memory_space<vmem>> -> memref<1x10xf32, #tpu.memory_space<vmem>>
        %c0_i32_10 = arith.constant 0 : i32
        %c0_i32_11 = arith.constant 0 : i32
        %11 = tpu.memref_slice %arg5[%c0_i32_10, %c0_i32_11] : memref<12x10xf32, #tpu.memory_space<any>> -> memref<1x10xf32, #tpu.memory_space<any>>
        %12 = tpu.memref_slice %arg7[%c0_i32_7] : memref<2x!tpu.dma_semaphore, #tpu.memory_space<semaphore_mem>> -> memref<1x!tpu.dma_semaphore, #tpu.memory_space<semaphore_mem>>
        %13 = tpu.memref_squeeze %12 : memref<1x!tpu.dma_semaphore, #tpu.memory_space<semaphore_mem>> -> memref<!tpu.dma_semaphore, #tpu.memory_space<semaphore_mem>>
        tpu.wait_dma2 semaphore(%13 : memref<!tpu.dma_semaphore, #tpu.memory_space<semaphore_mem>>) src(%10 : memref<1x10xf32, #tpu.memory_space<vmem>>) dst(%11 : memref<1x10xf32, #tpu.memory_space<any>>)
        %c1_i32_12 = arith.constant 1 : i32
        %c0_i32_13 = arith.constant 0 : i32
        %c0_i32_14 = arith.constant 0 : i32
        %14 = tpu.memref_slice %arg2[%c0_i32_13, %c0_i32_14] : memref<8x1xi32, #tpu.memory_space<vmem>> -> memref<1x1xi32, #tpu.memory_space<vmem>>
        %c0_i32_15 = arith.constant 0 : i32
        %c0_i32_16 = arith.constant 0 : i32
        %15 = tpu.memref_slice %arg6[%c0_i32_15, %c0_i32_16] : memref<12x1xi32, #tpu.memory_space<any>> -> memref<1x1xi32, #tpu.memory_space<any>>
        %16 = tpu.memref_slice %arg7[%c1_i32_12] : memref<2x!tpu.dma_semaphore, #tpu.memory_space<semaphore_mem>> -> memref<1x!tpu.dma_semaphore, #tpu.memory_space<semaphore_mem>>
        %17 = tpu.memref_squeeze %16 : memref<1x!tpu.dma_semaphore, #tpu.memory_space<semaphore_mem>> -> memref<!tpu.dma_semaphore, #tpu.memory_space<semaphore_mem>>
        tpu.wait_dma2 semaphore(%17 : memref<!tpu.dma_semaphore, #tpu.memory_space<semaphore_mem>>) src(%14 : memref<1x1xi32, #tpu.memory_space<vmem>>) dst(%15 : memref<1x1xi32, #tpu.memory_space<any>>)
      }
    } else {
    }
    return
  }
}

</mosaic_0001>

<bundles_post_ra>
// kernel: _memory_update.1
= control target key start
LH: loop header
LB: loop body
LE: loop exit
PB: predicated region body
PF: predicated region fallthrough
CT: control target
= control target key end

     0   :  { %s430_s0 = inlined_call_operand.<no memory space> [shape: s32[1], index: 0, kind: input, shape index: {}]   ;;  %s431_s1 = inlined_call_operand.vmem [shape: f32[8,10], index: 1, kind: input, shape index: {}]   ;;  %s432_s2 = inlined_call_operand.vmem [shape: s32[8,1], index: 2, kind: input, shape index: {}]   ;;  %s433_s3 = inlined_call_operand.vmem [shape: f32[12,10], index: 3, kind: input, shape index: {}, may-alias: {3,5}]   ;;  %s434_s4 = inlined_call_operand.vmem [shape: s32[12,1], index: 4, kind: input, shape index: {}, may-alias: {4,6}]   ;;  %s435_s5 = inlined_call_operand.vmem [shape: f32[12,10], index: 5, kind: output, shape index: {0}, may-alias: {3,5}]   ;;  %s436_s6 = inlined_call_operand.vmem [shape: s32[12,1], index: 6, kind: output, shape index: {1}, may-alias: {4,6}]  }
   0x1   :  { %s20_s23 = sadd.s32 8, %s430_s0 }
   0x2   :  { %p311_p0 = scmp.gt.s32.totalorder %s20_s23, 12 }
   0x3   :  { %s25_s27 = scalar_lea.vmem (!%p311_p0), %s435_s5, %s430_s0 }
   0x4   :  { %24 = sbr.rel (%p311_p0) target bundleno = 18 (0x12), region = 17 }
   0x9   :  { %v59_v0 = vld [vmem:[%s431_s1] sm:$0xff] }
   0xa   :  { %60 = vst [vmem:[%s25_s27] sm:$0xff] %v59_v0 }
   0xb   :  { %68 = vsyncadd [#allocation2], 128  ;;  %s69_s9 = scalar_lea.vmem %s436_s6, %s430_s0  ;;  %v104_v1 = vld [vmem:[%s432_s2] sm:$0xff] }
   0xc   :  { %105 = vst [vmem:[%s69_s9] sm:$0xff] %v104_v1 }
   0xd   :  { %113 = vsyncadd [#allocation2 + $0x1], 128 }
   0xe   :  { %343 = dma.done.wait [#allocation2], 128 }
   0xf   :  { %344 = vsyncadd [#allocation2], 4294967168 }
  0x10   :  { %345 = dma.done.wait [#allocation2 + $0x1], 128 }
  0x11   :  { %346 = vsyncadd [#allocation2 + $0x1], 4294967168 }
  0x12 PF:  { %p312_p1 = scmp.le.s32.totalorder %s20_s23, 12 }
  0x13   :  { %s351_s12 = smov (!%p312_p1), 0  }
  0x14   :  { %122 = sbr.rel (%p312_p1) target bundleno = 64 (0x40), region = 89 }
  0x19 LB: > { %s129_s15 = sadd.s32 %s353_s12, %s430_s0  ;;  %s137_s20 = scalar_lea.vmem %s431_s1, %s353_s12  ;;  %s353_s12 = sphi %s351_s12, %s128_s12  }
  0x1a   : > { %s131_s16 = ssub.s32 0, %s129_s15  ;;  %p130_p2 = scmp.lt.s32.totalorder %s129_s15, 0  ;;  %v157_v2 = vld [vmem:[%s137_s20] sm:$0x1] }
  0x1b   : > { %s313_s17 = smin.u32 %s131_s16, %s129_s15 }
  0x1c   : > { %333 = sdivrem.u32 %s313_s17, 12 }
  0x25   : > { %s334_s21 = spop.drf %333 }
  0x26   : > { %s135_s22 = ssub.s32 0, %s334_s21 }
  0x27   : > { %s438_s22 = smov (!%p130_p2, %s135_s22), %s334_s21 }
  0x28   : > { %s138_s25 = scalar_lea.vmem %s435_s5, %s438_s22 }
  0x29   : > { %158 = vst [vmem:[%s138_s25] sm:$0x1] %v157_v2 }
  0x2a   : > { %184 = vsyncadd [#allocation2], 16  ;;  %s185_s27 = scalar_lea.vmem %s432_s2, %s353_s12  ;;  %s186_s29 = scalar_lea.vmem %s436_s6, %s438_s22 }
  0x2b   : > { %v206_v3 = vld [vmem:[%s185_s27] sm:$0x1] }
  0x2c   : > { %207 = vst [vmem:[%s186_s29] sm:$0x1] %v206_v3 }
  0x2d   : > { %233 = vsyncadd [#allocation2 + $0x1], 16  ;;  %s128_s12 = sadd.s32 1, %s353_s12  }
  0x2e   : > { %p125_p3 = scmp.ge.s32.totalorder %s128_s12, 8  }
  0x2f   :  { %s355_s30 = smov (%p125_p3), 0  }
  0x30   :  { %127 = sbr.rel (!%p125_p3) target bundleno = 25 (0x19), region = 220 }
  0x35 LB: > { %347 = dma.done.wait [#allocation2], 16  ;;  %s357_s30 = sphi %s355_s30, %s239_s30  }
  0x36   : > { %348 = vsyncadd [#allocation2], 4294967280 }
  0x37   : > { %349 = dma.done.wait [#allocation2 + $0x1], 16 }
  0x38   : > { %350 = vsyncadd [#allocation2 + $0x1], 4294967280  ;;  %s239_s30 = sadd.s32 1, %s357_s30  }
  0x39   : > { %p236_p4 = scmp.ge.s32.totalorder %s239_s30, 8  }
  0x3b   :  { %238 = sbr.rel (!%p236_p4) target bundleno = 53 (0x35), region = 231 }
  0x40 PF:  { %246 = vsyncmov [#allocation2] }
  0x43   :  { %s247_s7 = vpop.sfrf %246 }
  0x44   :  { %p314_p5 = scmp.ne.s32.totalorder %s247_s7, 0 }
  0x46   :  { %251 = shalt.err (%p314_p5)  }
  0x47   :  { %253 = vsyncmov [#allocation2 + $0x1] }
  0x4a   :  { %s254_s8 = vpop.sfrf %253 }
  0x4b   :  { %p315_p6 = scmp.ne.s32.totalorder %s254_s8, 0 }
  0x4d   :  { %258 = shalt.err (%p315_p6)  }

</bundles_post_ra>
